<compile_context>
chip_gen: v5e
topology: v5e:2x2
jax: 0.10.0
libtpu: 0.0.40
codegen_flags: <defaults>
</compile_context>

<pallas_src>
import jax
import jax.numpy as jnp
from jax.experimental import pallas as pl
from jax.experimental.pallas import tpu as pltpu


EMBED_DIM = 128
NUM_HEADS = 4
LN_EPS = 1e-5


def _round_up(x, m):
    return ((x + m - 1) // m) * m


def _fused_kernel(x_ref, w_ref, vec_ref, o_ref):
    # Single fused matmul: (tile_m, d_cat) @ (d_cat, E) -> f32 accumulator.
    acc = jnp.dot(x_ref[...], w_ref[...], preferred_element_type=jnp.float32)

    # Packed small vectors (f32): row 0 = fused bias, row 1 = gamma, row 2 = beta.
    bias = vec_ref[0:1, :]
    gamma = vec_ref[1:2, :]
    beta = vec_ref[2:3, :]

    h = acc + bias

    # LayerNorm (biased variance, eps=1e-5) in f32.
    mean = jnp.mean(h, axis=-1, keepdims=True)
    cent = h - mean
    var = jnp.mean(cent * cent, axis=-1, keepdims=True)
    y = cent * jax.lax.rsqrt(var + LN_EPS)
    o_ref[...] = (y * gamma + beta).astype(o_ref.dtype)


def metadata_attention_fusion(x_img, x_meta, params, *, tile_m=512,
                              compute_dtype=jnp.float32,
                              out_dtype=jnp.float32):
    """Pallas implementation of MetadataAttentionFusion.forward.

    x_img:  (N, D_img)  float32
    x_meta: (N, D_meta) float32
    returns (N, EMBED_DIM) in out_dtype
    """
    n, d_img = x_img.shape
    _, d_meta = x_meta.shape
    e = EMBED_DIM

    # ---- Host-side algebraic folding (exact up to fp rounding) --------------
    w_img_t = params["img_proj_w"].T.astype(jnp.float32)            # (d_img, E)
    w_meta_t = params["meta_proj_w"].T.astype(jnp.float32)          # (d_meta, E)
    w_v_t = params["attn_in_proj_w"][2 * e:3 * e, :].T.astype(jnp.float32)  # (E, E)
    b_v = params["attn_in_proj_b"][2 * e:3 * e].astype(jnp.float32)
    w_o_t = params["attn_out_proj_w"].T.astype(jnp.float32)         # (E, E)
    b_o = params["attn_out_proj_b"].astype(jnp.float32)
    b_img = params["img_proj_b"].astype(jnp.float32)
    b_meta = params["meta_proj_b"].astype(jnp.float32)

    # attention branch collapses: attn = X_meta @ (Wm^T Wv^T Wo^T) + b_attn
    w_attn = (w_meta_t @ w_v_t) @ w_o_t                              # (d_meta, E)
    b_attn = (b_meta @ w_v_t) @ w_o_t + b_v @ w_o_t + b_o            # (E,)

    # Q + attn == [X_img | X_meta] @ [W_img^T ; W_attn] + (b_img + b_attn)
    w_fused = jnp.concatenate([w_img_t, w_attn], axis=0)             # (d_cat, E)
    b_fused = b_img + b_attn                                         # (E,)

    x_cat = jnp.concatenate(
        [x_img.astype(jnp.float32), x_meta.astype(jnp.float32)], axis=1)
    d_cat = d_img + d_meta

    # Pack bias / gamma / beta into a single (8, E) f32 tile (one DMA stream).
    vecs = jnp.zeros((8, e), jnp.float32)
    vecs = vecs.at[0].set(b_fused)
    vecs = vecs.at[1].set(params["ln_gamma"].astype(jnp.float32))
    vecs = vecs.at[2].set(params["ln_beta"].astype(jnp.float32))

    # ---- Tile sizing + row padding (no divisibility burden on callers) -----
    tm = max(8, min(_round_up(tile_m, 8), _round_up(n, 8)))
    n_pad = _round_up(n, tm)
    if n_pad != n:
        x_cat = jnp.pad(x_cat, ((0, n_pad - n), (0, 0)))

    x_cat = x_cat.astype(compute_dtype)
    w_fused = w_fused.astype(compute_dtype)

    out = pl.pallas_call(
        _fused_kernel,
        out_shape=jax.ShapeDtypeStruct((n_pad, e), out_dtype),
        grid=(n_pad // tm,),
        in_specs=[
            pl.BlockSpec((tm, d_cat), lambda i: (i, 0)),   # activation row tile
            pl.BlockSpec((d_cat, e), lambda i: (0, 0)),    # fused weight (resident)
            pl.BlockSpec((8, e), lambda i: (0, 0)),        # packed bias/gamma/beta
        ],
        out_specs=pl.BlockSpec((tm, e), lambda i: (i, 0)),
        compiler_params=pltpu.CompilerParams(
            dimension_semantics=("parallel",)),
    )(x_cat, w_fused, vecs)

    return out[:n]


def init_params(d_img, d_meta, embed_dim=EMBED_DIM, seed=42):
    """Deterministic synthetic parameters matching the nn.Module shapes."""
    keys = jax.random.split(jax.random.PRNGKey(seed), 8)
    u = lambda k, shape, scale: jax.random.uniform(
        k, shape, jnp.float32, -scale, scale)
    return {
        "img_proj_w": u(keys[0], (embed_dim, d_img), 1.0 / jnp.sqrt(d_img)),
        "img_proj_b": u(keys[1], (embed_dim,), 1.0 / jnp.sqrt(d_img)),
        "meta_proj_w": u(keys[2], (embed_dim, d_meta), 1.0 / jnp.sqrt(d_meta)),
        "meta_proj_b": u(keys[3], (embed_dim,), 1.0 / jnp.sqrt(d_meta)),
        "attn_in_proj_w": u(keys[4], (3 * embed_dim, embed_dim),
                            1.0 / jnp.sqrt(embed_dim)),
        "attn_in_proj_b": u(keys[6], (3 * embed_dim,), 1.0 / jnp.sqrt(embed_dim)),
        "attn_out_proj_w": u(keys[5], (embed_dim, embed_dim),
                             1.0 / jnp.sqrt(embed_dim)),
        "attn_out_proj_b": u(keys[7], (embed_dim,), 1.0 / jnp.sqrt(embed_dim)),
        "ln_gamma": jnp.ones((embed_dim,), jnp.float32),
        "ln_beta": jnp.zeros((embed_dim,), jnp.float32),
    }


def _reference(x_img, x_meta, params):
    """Pure-JAX reference following the original (unfolded) module math."""
    e = EMBED_DIM
    q = x_img @ params["img_proj_w"].T + params["img_proj_b"]
    k = x_meta @ params["meta_proj_w"].T + params["meta_proj_b"]
    v = k @ params["attn_in_proj_w"][2 * e:3 * e, :].T + \
        params["attn_in_proj_b"][2 * e:3 * e]
    attn = v @ params["attn_out_proj_w"].T + params["attn_out_proj_b"]
    x = q + attn
    mean = jnp.mean(x, axis=-1, keepdims=True)
    var = jnp.mean((x - mean) ** 2, axis=-1, keepdims=True)
    y = (x - mean) / jnp.sqrt(var + LN_EPS)
    return y * params["ln_gamma"] + params["ln_beta"]


if __name__ == "__main__":
    # Small shapes consistent with the module's forward signature.
    N, D_IMG, D_META = 8, 32, 16

    kx, km = jax.random.split(jax.random.PRNGKey(0))
    x_img = jax.random.normal(kx, (N, D_IMG), jnp.float32)
    x_meta = jax.random.normal(km, (N, D_META), jnp.float32)
    params = init_params(D_IMG, D_META)

    # f32 path (default), tight tolerance vs the unfolded reference.
    out = metadata_attention_fusion(x_img, x_meta, params)
    out = jax.block_until_ready(out)
    ref = _reference(x_img, x_meta, params)
    assert out.shape == (N, EMBED_DIM)
    assert jnp.allclose(out, ref, atol=1e-4, rtol=1e-4), "f32 mismatch vs reference"

    # Ragged-N path (exercises padding + tile_m clamp), still f32.
    N2 = 300
    kx2, km2 = jax.random.split(jax.random.PRNGKey(1))
    x_img2 = jax.random.normal(kx2, (N2, D_IMG), jnp.float32)
    x_meta2 = jax.random.normal(km2, (N2, D_META), jnp.float32)
    out2 = jax.block_until_ready(
        metadata_attention_fusion(x_img2, x_meta2, params, tile_m=512))
    ref2 = _reference(x_img2, x_meta2, params)
    assert out2.shape == (N2, EMBED_DIM)
    assert jnp.allclose(out2, ref2, atol=1e-4, rtol=1e-4), "ragged-N mismatch"

    # bf16 compute path (v6e/v7x bandwidth optimization): f32 accumulation and
    # LN math, looser tolerance due to bf16 input/weight rounding.
    out_bf16 = jax.block_until_ready(
        metadata_attention_fusion(x_img, x_meta, params,
                                  compute_dtype=jnp.bfloat16,
                                  out_dtype=jnp.float32))
    assert jnp.allclose(out_bf16, ref, atol=3e-2, rtol=3e-2), "bf16 mismatch"

    print("KERNEL_OK")
</pallas_src>

<mosaic_0001>
module attributes {stable_mosaic.version = 11 : i64} {
  func.func @_fused_kernel(%arg0: i32, %arg1: memref<8x48xf32, #tpu.memory_space<vmem>>, %arg2: memref<48x128xf32, #tpu.memory_space<vmem>>, %arg3: memref<8x128xf32, #tpu.memory_space<vmem>>, %arg4: memref<8x128xf32, #tpu.memory_space<vmem>>) attributes {dimension_semantics = [#tpu.dimension_semantics<parallel>], iteration_bounds = array<i64: 1>, scalar_prefetch = 0 : i64, scratch_operands = 0 : i64, tpu.core_type = #tpu.core_type<tc>, window_params = [{transform_indices = @transform_0, window_bounds = array<i64: 8, 48>}, {pipeline_mode = #tpu.pipeline_mode<synchronous>, transform_indices = @transform_1, window_bounds = array<i64: 48, 128>}, {pipeline_mode = #tpu.pipeline_mode<synchronous>, transform_indices = @transform_2, window_bounds = array<i64: 8, 128>}, {transform_indices = @transform_3, window_bounds = array<i64: 8, 128>}]} {
    %c0 = arith.constant 0 : index
    %c0_0 = arith.constant 0 : index
    %0 = vector.load %arg1[%c0, %c0_0] : memref<8x48xf32, #tpu.memory_space<vmem>>, vector<8x48xf32>
    %c0_1 = arith.constant 0 : index
    %c0_2 = arith.constant 0 : index
    %1 = vector.load %arg2[%c0_1, %c0_2] : memref<48x128xf32, #tpu.memory_space<vmem>>, vector<48x128xf32>
    %cst = arith.constant dense<0.000000e+00> : vector<8x128xf32>
    %2 = tpu.matmul %0, %1, %cst {dimension_numbers = #tpu.dot_dimension_numbers<[1], [0], [0], [1], [0, 0, 1, 1], [], []>} : vector<8x48xf32>, vector<48x128xf32>, vector<8x128xf32> -> vector<8x128xf32>
    %c0_3 = arith.constant 0 : index
    %c0_4 = arith.constant 0 : index
    %3 = vector.load %arg3[%c0_3, %c0_4] : memref<8x128xf32, #tpu.memory_space<vmem>>, vector<1x128xf32>
    %c1 = arith.constant 1 : index
    %c0_5 = arith.constant 0 : index
    %4 = vector.load %arg3[%c1, %c0_5] : memref<8x128xf32, #tpu.memory_space<vmem>>, vector<1x128xf32>
    %c2 = arith.constant 2 : index
    %c0_6 = arith.constant 0 : index
    %5 = vector.load %arg3[%c2, %c0_6] : memref<8x128xf32, #tpu.memory_space<vmem>>, vector<1x128xf32>
    %6 = vector.broadcast %3 : vector<1x128xf32> to vector<8x128xf32>
    %7 = arith.addf %2, %6 : vector<8x128xf32>
    %cst_7 = arith.constant dense<0.000000e+00> : vector<8xf32>
    %8 = vector.multi_reduction <add>, %7, %cst_7 [1] : vector<8x128xf32> to vector<8xf32>
    %9 = vector.shape_cast %8 : vector<8xf32> to vector<8x1xf32>
    %cst_8 = arith.constant 1.280000e+02 : f32
    %10 = vector.broadcast %cst_8 : f32 to vector<8x1xf32>
    %11 = arith.divf %9, %10 : vector<8x1xf32>
    %12 = vector.broadcast %11 : vector<8x1xf32> to vector<8x128xf32>
    %13 = arith.subf %7, %12 : vector<8x128xf32>
    %14 = arith.mulf %13, %13 : vector<8x128xf32>
    %cst_9 = arith.constant dense<0.000000e+00> : vector<8xf32>
    %15 = vector.multi_reduction <add>, %14, %cst_9 [1] : vector<8x128xf32> to vector<8xf32>
    %16 = vector.shape_cast %15 : vector<8xf32> to vector<8x1xf32>
    %cst_10 = arith.constant 1.280000e+02 : f32
    %17 = vector.broadcast %cst_10 : f32 to vector<8x1xf32>
    %18 = arith.divf %16, %17 : vector<8x1xf32>
    %cst_11 = arith.constant 9.99999974E-6 : f32
    %19 = vector.broadcast %cst_11 : f32 to vector<8x1xf32>
    %20 = arith.addf %18, %19 : vector<8x1xf32>
    %21 = math.rsqrt %20 : vector<8x1xf32>
    %22 = vector.broadcast %21 : vector<8x1xf32> to vector<8x128xf32>
    %23 = arith.mulf %13, %22 : vector<8x128xf32>
    %24 = vector.broadcast %4 : vector<1x128xf32> to vector<8x128xf32>
    %25 = arith.mulf %23, %24 : vector<8x128xf32>
    %26 = vector.broadcast %5 : vector<1x128xf32> to vector<8x128xf32>
    %27 = arith.addf %25, %26 : vector<8x128xf32>
    %c0_12 = arith.constant 0 : index
    %c0_13 = arith.constant 0 : index
    %28 = vector.load %arg4[%c0_12, %c0_13] : memref<8x128xf32, #tpu.memory_space<vmem>>, vector<8x128xf32>
    tpu.vector_store %arg4[%c0_12, %c0_13], %27 {strides = array<i32>} : memref<8x128xf32, #tpu.memory_space<vmem>>, vector<8x128xf32>,
    return
  }
  func.func @transform_0(%arg0: i32) -> (i32, i32) {
    %c0_i32 = arith.constant 0 : i32
    %c0_i32_0 = arith.constant 0 : i32
    return %arg0, %c0_i32 : i32, i32
  }
  func.func @transform_1(%arg0: i32) -> (i32, i32) {
    %c0_i32 = arith.constant 0 : i32
    %c0_i32_0 = arith.constant 0 : i32
    %c0_i32_1 = arith.constant 0 : i32
    return %c0_i32, %c0_i32_0 : i32, i32
  }
  func.func @transform_2(%arg0: i32) -> (i32, i32) {
    %c0_i32 = arith.constant 0 : i32
    %c0_i32_0 = arith.constant 0 : i32
    %c0_i32_1 = arith.constant 0 : i32
    return %c0_i32, %c0_i32_0 : i32, i32
  }
  func.func @transform_3(%arg0: i32) -> (i32, i32) {
    %c0_i32 = arith.constant 0 : i32
    %c0_i32_0 = arith.constant 0 : i32
    return %arg0, %c0_i32 : i32, i32
  }
}

</mosaic_0001>

<bundles_post_ra>
// kernel: tpu_custom_call.1
= control target key start
LH: loop header
LB: loop body
LE: loop exit
PB: predicated region body
PF: predicated region fallthrough
CT: control target
= control target key end

     0   :  { %8 = vsyncpa [#allocation3], 0  ;;  %s299_s0 = inlined_call_operand.hbm [shape: f32[8,48], index: 0, kind: input, shape index: {}]   ;;  %s300_s1 = inlined_call_operand.hbm [shape: f32[48,128], index: 1, kind: input, shape index: {}]   ;;  %s301_s2 = inlined_call_operand.hbm [shape: f32[8,128], index: 2, kind: input, shape index: {}]   ;;  %s302_s3 = inlined_call_operand.hbm [shape: f32[8,128], index: 3, kind: output, shape index: {}]  }
   0x1   :  { %9 = vsyncpa [#allocation6], 0  ;;  %s26_s14 = sshll.u32 %s300_s1, 4  ;;  %s27_s14 = int_to_ptr.hbm [resolvable:$true] %s26_s14 }
   0x2   :  { %10 = vsyncpa [#allocation4], 0  ;;  %s260_s15 = smov [#allocation5]   ;;  %s16_s19 = sshll.u32 %s299_s0, 4  ;;  %s17_s19 = int_to_ptr.hbm [resolvable:$true] %s16_s19 }
   0x3   :  { %s28_s16 = sshll.u32 %s260_s15, 4  ;;  %s261_s20 = smov 128   ;;  %s29_s16 = int_to_ptr.vmem [resolvable:$true] %s28_s16 }
   0x4   :  { %s262_s21 = smov 8   ;;  %s263_s22 = smov [#allocation2]  }
   0x5   :  { %34 = dma.hbm_to_vmem [thread:$0]  %s27_s14, 768, %s29_s16, [#allocation6], %s261_s20, %s261_s20, %s262_s21  }
   0x6   :  { %s18_s23 = sshll.u32 %s263_s22, 4  ;;  %s40_s26 = sshll.u32 %s301_s2, 4  ;;  %s19_s23 = int_to_ptr.vmem [resolvable:$true] %s18_s23  ;;  %s41_s26 = int_to_ptr.hbm [resolvable:$true] %s40_s26 }
   0x7   :  { %21 = dma.hbm_to_vmem [thread:$0]  %s17_s19, 128, %s19_s23, [#allocation3]  }
   0x8   :  { %s264_s1 = smov [#allocation7]  }
   0x9   :  { %s42_s27 = sshll.u32 %s264_s1, 4  ;;  %s43_s27 = int_to_ptr.vmem [resolvable:$true] %s42_s27 }
   0xa   :  { %45 = dma.hbm_to_vmem [thread:$0]  %s41_s26, 128, %s43_s27, [#allocation6]  }
   0xb   :  { %254 = dma.done.wait [#allocation3], 128  }
   0xc   :  { %255 = vsyncadd [#allocation3], 4294967168 }
   0xd   :  { %256 = dma.done.wait [#allocation6], 896  }
   0xe   :  { %257 = vsyncadd [#allocation6], 4294966400  ;;  %v64_v0 = vld [vmem:[#allocation5 + $0x28] sm:$0xff]  ;;  %v63_v1 = vld [vmem:[#allocation5 + $0x20] sm:$0xff]  ;;  %vm69_vm0 = vcmask 392192   ;;  %v265_v10 = vmov 128.0  }
   0xf   :  { %83 = vmatpush.msra.mxu0 %v64_v0  ;;  %v62_v2 = vld [vmem:[#allocation5 + $0x18] sm:$0xff]  ;;  %v61_v3 = vld [vmem:[#allocation5 + $0x10] sm:$0xff]  ;;  %v60_v4 = vld [vmem:[#allocation5 + $0x8] sm:$0xff]  ;;  %154 = vrcp.f32 %v265_v10  ;;  %s266_s0 = smov [#allocation8]   ;;  %s132_s30 = sshll.u32 %s302_s3, 4  ;;  %s133_s30 = int_to_ptr.hbm [resolvable:$true] %s132_s30 }
  0x10   :  { %v59_v5 = vld [vmem:[#allocation5] sm:$0xff]  ;;  %v58_v6 = vld [vmem:[#allocation2] sm:$0xff]  ;;  %v151_v7 = vld [vmem:[#allocation7] ss:$0 sm:$0xff]  ;;  %s130_s2 = sshll.u32 %s266_s0, 4  ;;  %s131_s2 = int_to_ptr.vmem [resolvable:$true] %s130_s2 }
  0x11   :  { %84 = vmatpush.msra.mxu0 %v63_v1  ;;  %v152_v30 = vld [vmem:[#allocation7 + $0x1] ss:$0 sm:$0xff]  ;;  %v153_v33 = vld [vmem:[#allocation7 + $0x2] ss:$0 sm:$0xff] }
  0x13   :  { %85 = vmatpush.msra.mxu0 %v62_v2 }
  0x15   :  { %86 = vmatpush.msra.mxu0 %v61_v3  ;;  %v155_v11 = vpop.eup %154 }
  0x16   :  { %v96_v12 = vmul.f32 128.0, %v155_v11  ;;  %vm100_vm1 = vweird.f32 %v155_v11 }
  0x17   :  { %87 = vmatpush.msra.mxu0 %v60_v4 }
  0x18   :  { %v97_v13 = vsub.f32 1.0, %v96_v12 }
  0x19   :  { %88 = vmatpush.msra.mxu0 %v59_v5 }
  0x1a   :  { %143 = vmatmul.msk.f32.vlgmr.msra.gmra.mxu0 %vm69_vm0, %v58_v6  ;;  %v98_v14 = vmul.f32 %v155_v11, %v97_v13 }
  0x1c   :  { %v99_v15 = vadd.f32 %v155_v11, %v98_v14 }
  0x1e   :  { %v101_v16 = vsel %vm100_vm1, %v155_v11, %v99_v15 }
  0x97   :  { %v90_v8 = vpop.f32.mrf.mxu0 }
  0x98   :  { %v91_v9 = vadd.f32 %v151_v7, %v90_v8 }
  0x9a   :  { %93 = vadd.xlane.f32.xlu0 %v91_v9 }
 0x10d   :  { %v94_v17 = vpop.xlane.xlu0 %93 }
 0x10e   :  { %v102_v18 = vmul.f32 %v101_v16, %v94_v17 }
 0x110   :  { %v103_v19 = vsub.f32 %v91_v9, %v102_v18 }
 0x112   :  { %v104_v20 = vmul.f32 %v103_v19, %v103_v19 }
 0x114   :  { %105 = vadd.xlane.f32.xlu0 %v104_v20 }
 0x187   :  { %v106_v21 = vpop.xlane.xlu0 %105 }
 0x188   :  { %v107_v22 = vmul.f32 %v106_v21, %v101_v16 }
 0x18a   :  { %v108_v23 = vadd.f32 1e-05, %v107_v22 }
 0x18c   :  { %156 = vrsqrt.f32 %v108_v23  ;;  %vm115_vm3 = vweird.f32 %v108_v23 }
 0x192   :  { %v157_v24 = vpop.eup %156 }
 0x193   :  { %v110_v25 = vmul.f32 %v157_v24, %v108_v23  ;;  %vm116_vm2 = vweird.f32 %v157_v24 }
 0x194   :  { %vm117_vm4 = vmor %vm115_vm3, %vm116_vm2 }
 0x195   :  { %v111_v26 = vmul.f32 %v157_v24, %v110_v25 }
 0x197   :  { %v112_v27 = vmul.f32 0.5, %v111_v26 }
 0x199   :  { %v113_v28 = vsub.f32 1.5, %v112_v27 }
 0x19b   :  { %v114_v29 = vmul.f32 %v157_v24, %v113_v28 }
 0x19d   :  { %v118_v31 = vsel %vm117_vm4, %v157_v24, %v114_v29 }
 0x19e   :  { %v119_v32 = vmul.f32 %v118_v31, %v103_v19 }
 0x1a0   :  { %v121_v34 = vmul.f32 %v152_v30, %v119_v32 }
 0x1a2   :  { %v123_v35 = vadd.f32 %v153_v33, %v121_v34 }
 0x1a4   :  { %124 = vst [vmem:[#allocation8] sm:$0xff] %v123_v35 }
 0x1a5   :  { %135 = dma.vmem_to_hbm [thread:$0]  %s131_s2, 128, %s133_s30, [#allocation4]  }
 0x1a6   :  { %258 = dma.done.wait [#allocation4], 128  }
 0x1a7   :  { %259 = vsyncadd [#allocation4], 4294967168 }
 0x1a8   :  { %140 = vsyncpa [#allocation3], 1 }
 0x1a9   :  { %141 = vsyncpa [#allocation6], 1 }
 0x1aa   :  { %142 = vsyncpa [#allocation4], 1 }

</bundles_post_ra>
